<compile_context>
chip_gen: v7x
topology: tpu7x:2x2x1
jax: 0.10.0
libtpu: 0.0.40
codegen_flags: <defaults>
</compile_context>

<pallas_src>
import functools

import jax
import jax.numpy as jnp
from jax.experimental import pallas as pl
from jax.experimental.pallas import tpu as pltpu

_LANES = 128
_SUBLANES = 8
# Only split the batch into >= 2 grid steps (for v7x's 2 TensorCores) when each half
# still has at least this many rows; smaller tiles hurt the HBM roofline on 1-TC chips.
_MIN_SPLIT_ROWS = 256


def _round_up(x, m):
    return ((x + m - 1) // m) * m


def _discriminator_kernel(num_hidden,
                          x_ref, wh_ref, bh_ref, wo_ref, bo_ref,
                          flat_ref, logit_ref):
    """One batch tile; all parameters VMEM-resident across grid steps.

    x_ref    : (TB, D)   input dtype (f32 or bf16)
    wh_ref   : (H, D, D) compute dtype (f32 or bf16), pre-transposed to (in, out)
    bh_ref   : (H, 1, D) float32
    wo_ref   : (D, Lp)   compute dtype, zero-padded past the real labels
    bo_ref   : (1, Lp)   float32, zero-padded
    flat_ref : (TB, D)   flat dtype (defaults to x dtype)
    logit_ref: (TB, Lp)  float32   (lane-dense, Lp multiple of 128)
    """
    cdt = wh_ref.dtype                                  # matmul input dtype
    xv = x_ref[...]
    hc = xv.astype(cdt)                                 # MXU input (bf16 on v6e/v7x)
    h32 = xv.astype(jnp.float32)                        # only used if num_hidden == 0

    # Hidden stack: Linear -> LeakyReLU.  Dropout is identity in eval mode.
    for i in range(num_hidden):                         # static unroll
        w = wh_ref[i]                                   # (D, D)
        b = bh_ref[i]                                   # (1, D) f32
        h32 = jnp.dot(hc, w, preferred_element_type=jnp.float32) + b
        h32 = jnp.maximum(h32, 0.01 * h32)              # F.leaky_relu default slope
        hc = h32.astype(cdt)                            # carry next-layer input in cdt

    flat_ref[...] = h32.astype(flat_ref.dtype)

    # Output projection into a lane-dense 128-wide slab (pad cols are zero; they get
    # sliced off outside the kernel — softmax is computed in XLA on the real L lanes).
    logit = jnp.dot(hc, wo_ref[...], preferred_element_type=jnp.float32) + bo_ref[...]
    logit_ref[...] = logit.astype(logit_ref.dtype)


def prepare_discriminator_params(hidden_ws, hidden_bs, out_w, out_b,
                                 compute_dtype=jnp.bfloat16):
    """One-time parameter preparation (hoisted out of the forward path).

    hidden_ws: list of (D, D) PyTorch-style (out, in) weights.
    hidden_bs: list of (D,).   out_w: (L, D).   out_b: (L,).
    Weights are pre-transposed to (in, out), stacked, label dim padded to 128.
    """
    L, D = out_w.shape
    Lp = _round_up(L, _LANES)
    wh = jnp.stack([jnp.asarray(w).T for w in hidden_ws], axis=0).astype(compute_dtype)
    bh = jnp.stack([jnp.asarray(b).reshape(1, D) for b in hidden_bs],
                   axis=0).astype(jnp.float32)
    wo = jnp.zeros((D, Lp), compute_dtype).at[:, :L].set(
        jnp.asarray(out_w).T.astype(compute_dtype))
    bo = jnp.zeros((1, Lp), jnp.float32).at[:, :L].set(
        jnp.asarray(out_b).astype(jnp.float32))
    return {"wh": wh, "bh": bh, "wo": wo, "bo": bo, "num_out": L}


def discriminator_forward(x, params, *, block_b=1024, flat_dtype=None):
    """x: (B, D).  params: output of prepare_discriminator_params."""
    B, D = x.shape
    wh, bh, wo, bo = params["wh"], params["bh"], params["wo"], params["bo"]
    L = params["num_out"]
    H = wh.shape[0]
    Lp = wo.shape[1]
    if flat_dtype is None:
        flat_dtype = x.dtype        # no wrapper-side cast; take what the producer gives

    # Batch tile: multiple of 8 sublanes, large enough to amortize per-step overhead
    # and sit on the HBM roofline for this bandwidth-bound kernel.
    tb = min(_round_up(B, _SUBLANES), _round_up(block_b, _SUBLANES))
    # v7x: guarantee >= 2 grid steps so both TensorCores get work, but only when each
    # half still keeps a roofline-friendly tile (no effect on v5e/v6e perf otherwise).
    if B >= 2 * _MIN_SPLIT_ROWS:
        tb = min(tb, _round_up(pl.cdiv(B, 2), _SUBLANES))
    grid = (pl.cdiv(B, tb),)   # no XLA-side pad: Pallas masks the ragged last block

    wbytes = jnp.dtype(wh.dtype).itemsize
    xbytes = jnp.dtype(x.dtype).itemsize
    fbytes = jnp.dtype(flat_dtype).itemsize

    # VMEM budget: resident params (x2 pipeline buffers) + double-buffered activation
    # tiles, +50% headroom, clamped to 48 MiB so the sizing is safe on v7x (64 MiB).
    resident = H * D * D * wbytes + H * D * 4 + D * Lp * wbytes + Lp * 4
    tiles = 2 * tb * D * (xbytes + fbytes) + 2 * tb * Lp * 4
    vmem_limit = int(min(max((2 * resident + tiles) * 1.5, 16 * 2**20), 48 * 2**20))

    cost = pl.CostEstimate(
        flops=2 * B * D * (H * D + Lp),
        transcendentals=0,
        bytes_accessed=B * D * (xbytes + fbytes) + B * Lp * 4 + resident,
    )

    flat, logit = pl.pallas_call(
        functools.partial(_discriminator_kernel, H),
        out_shape=(
            jax.ShapeDtypeStruct((B, D), flat_dtype),
            jax.ShapeDtypeStruct((B, Lp), jnp.float32),
        ),
        grid=grid,
        in_specs=[
            pl.BlockSpec((tb, D), lambda i: (i, 0)),          # x: tiled over batch
            pl.BlockSpec((H, D, D), lambda i: (0, 0, 0)),     # weights: resident
            pl.BlockSpec((H, 1, D), lambda i: (0, 0, 0)),
            pl.BlockSpec((D, Lp), lambda i: (0, 0)),
            pl.BlockSpec((1, Lp), lambda i: (0, 0)),
        ],
        out_specs=(
            pl.BlockSpec((tb, D), lambda i: (i, 0)),
            pl.BlockSpec((tb, Lp), lambda i: (i, 0)),
        ),
        compiler_params=pltpu.CompilerParams(
            dimension_semantics=("parallel",),                # shards across v7x's 2 TCs
            vmem_limit_bytes=vmem_limit,
        ),
        cost_estimate=cost,
    )(x, wh, bh, wo, bo)

    # Slice the padded label lanes off and do the (tiny) exact softmax in XLA.
    logit = logit[:, :L]
    prob = jax.nn.softmax(logit.astype(jnp.float32), axis=1)
    return flat, logit, prob


def _reference(x, hidden_ws, hidden_bs, out_w, out_b):
    h = x.astype(jnp.float32)
    for w, b in zip(hidden_ws, hidden_bs):
        h = h @ w.T + b
        h = jnp.where(h > 0, h, 0.01 * h)
    logit = h @ out_w.T + out_b
    prob = jax.nn.softmax(logit, axis=1)
    return h, logit, prob


if __name__ == "__main__":
    # Module config: Discriminator(d_hidden_size=128, dkp=0.1, num_labels=3, num_hidden=2)
    B, D, num_labels, num_hidden = 8, 128, 3, 2
    L = num_labels + 1

    key = jax.random.PRNGKey(0)
    keys = jax.random.split(key, 2 * num_hidden + 3)

    x = jax.random.normal(keys[0], (B, D), dtype=jnp.float32)
    hidden_ws = [0.02 * jax.random.normal(keys[1 + 2 * i], (D, D), jnp.float32)
                 for i in range(num_hidden)]
    hidden_bs = [0.01 * jax.random.normal(keys[2 + 2 * i], (D,), jnp.float32)
                 for i in range(num_hidden)]
    out_w = 0.02 * jax.random.normal(keys[-2], (L, D), jnp.float32)
    out_b = 0.01 * jax.random.normal(keys[-1], (L,), jnp.float32)

    rf, rl, rp = _reference(x, hidden_ws, hidden_bs, out_w, out_b)

    # float32-weight path: tight tolerances (softmax is now exact, done in XLA).
    p32 = prepare_discriminator_params(hidden_ws, hidden_bs, out_w, out_b,
                                       compute_dtype=jnp.float32)
    flat32, logit32, prob32 = discriminator_forward(x, p32)
    jax.block_until_ready((flat32, logit32, prob32))
    assert flat32.shape == (B, D) and logit32.shape == (B, L) and prob32.shape == (B, L)
    assert jnp.allclose(flat32, rf, atol=1e-4, rtol=1e-4)
    assert jnp.allclose(logit32, rl, atol=1e-4, rtol=1e-4)
    assert jnp.allclose(prob32, rp, atol=5e-4, rtol=5e-4)

    # bf16-weight path (f32 accumulation): looser tolerances.
    pbf = prepare_discriminator_params(hidden_ws, hidden_bs, out_w, out_b,
                                       compute_dtype=jnp.bfloat16)
    flatb, logitb, probb = discriminator_forward(x, pbf)
    jax.block_until_ready((flatb, logitb, probb))
    assert jnp.allclose(flatb, rf, atol=3e-2, rtol=3e-2)
    assert jnp.allclose(logitb, rl, atol=3e-2, rtol=3e-2)
    assert jnp.allclose(probb, rp, atol=3e-2, rtol=3e-2)

    # Ragged-batch / multi-step-grid path: B not a multiple of the batch tile
    # (exercises Pallas' padded-read / masked-write handling, no XLA-side pad).
    Brag = 12
    xr = jax.random.normal(keys[0], (Brag, D), dtype=jnp.float32)
    rrf, rrl, rrp = _reference(xr, hidden_ws, hidden_bs, out_w, out_b)
    flr, lgr, prr = discriminator_forward(xr, p32, block_b=8)
    jax.block_until_ready((flr, lgr, prr))
    assert flr.shape == (Brag, D) and lgr.shape == (Brag, L) and prr.shape == (Brag, L)
    assert jnp.allclose(flr, rrf, atol=1e-4, rtol=1e-4)
    assert jnp.allclose(lgr, rrl, atol=1e-4, rtol=1e-4)
    assert jnp.allclose(prr, rrp, atol=5e-4, rtol=5e-4)

    print("KERNEL_OK")
</pallas_src>

<mosaic_0001>
module attributes {stable_mosaic.version = 11 : i64} {
  func.func @_discriminator_kernel(%arg0: i32, %arg1: memref<8x128xf32, #tpu.memory_space<vmem>>, %arg2: memref<2x128x128xf32, #tpu.memory_space<vmem>>, %arg3: memref<2x1x128xf32, #tpu.memory_space<vmem>>, %arg4: memref<128x128xf32, #tpu.memory_space<vmem>>, %arg5: memref<1x128xf32, #tpu.memory_space<vmem>>, %arg6: memref<8x128xf32, #tpu.memory_space<vmem>>, %arg7: memref<8x128xf32, #tpu.memory_space<vmem>>) attributes {dimension_semantics = [#tpu.dimension_semantics<parallel>], iteration_bounds = array<i64: 1>, scalar_prefetch = 0 : i64, scratch_operands = 0 : i64, tpu.core_type = #tpu.core_type<tc>, window_params = [{transform_indices = @transform_0, window_bounds = array<i64: 8, 128>}, {pipeline_mode = #tpu.pipeline_mode<synchronous>, transform_indices = @transform_1, window_bounds = array<i64: 2, 128, 128>}, {pipeline_mode = #tpu.pipeline_mode<synchronous>, transform_indices = @transform_2, window_bounds = array<i64: 2, 1, 128>}, {pipeline_mode = #tpu.pipeline_mode<synchronous>, transform_indices = @transform_3, window_bounds = array<i64: 128, 128>}, {pipeline_mode = #tpu.pipeline_mode<synchronous>, transform_indices = @transform_4, window_bounds = array<i64: 1, 128>}, {transform_indices = @transform_5, window_bounds = array<i64: 8, 128>}, {transform_indices = @transform_6, window_bounds = array<i64: 8, 128>}]} {
    %c0 = arith.constant 0 : index
    %c0_0 = arith.constant 0 : index
    %0 = vector.load %arg1[%c0, %c0_0] : memref<8x128xf32, #tpu.memory_space<vmem>>, vector<8x128xf32>
    %c0_1 = arith.constant 0 : index
    %c0_2 = arith.constant 0 : index
    %c0_3 = arith.constant 0 : index
    %1 = vector.load %arg2[%c0_1, %c0_2, %c0_3] : memref<2x128x128xf32, #tpu.memory_space<vmem>>, vector<1x128x128xf32>
    %2 = vector.shape_cast %1 : vector<1x128x128xf32> to vector<128x128xf32>
    %c0_4 = arith.constant 0 : index
    %c0_5 = arith.constant 0 : index
    %c0_6 = arith.constant 0 : index
    %3 = vector.load %arg3[%c0_4, %c0_5, %c0_6] : memref<2x1x128xf32, #tpu.memory_space<vmem>>, vector<1x1x128xf32>
    %4 = vector.shape_cast %3 : vector<1x1x128xf32> to vector<1x128xf32>
    %cst = arith.constant dense<0.000000e+00> : vector<8x128xf32>
    %5 = tpu.matmul %0, %2, %cst {dimension_numbers = #tpu.dot_dimension_numbers<[1], [0], [0], [1], [0, 0, 1, 1], [], []>} : vector<8x128xf32>, vector<128x128xf32>, vector<8x128xf32> -> vector<8x128xf32>
    %6 = vector.broadcast %4 : vector<1x128xf32> to vector<8x128xf32>
    %7 = arith.addf %5, %6 : vector<8x128xf32>
    %cst_7 = arith.constant 0.00999999977 : f32
    %8 = vector.broadcast %cst_7 : f32 to vector<8x128xf32>
    %9 = arith.mulf %8, %7 : vector<8x128xf32>
    %10 = arith.maximumf %7, %9 : vector<8x128xf32>
    %c1 = arith.constant 1 : index
    %c0_8 = arith.constant 0 : index
    %c0_9 = arith.constant 0 : index
    %11 = vector.load %arg2[%c1, %c0_8, %c0_9] : memref<2x128x128xf32, #tpu.memory_space<vmem>>, vector<1x128x128xf32>
    %12 = vector.shape_cast %11 : vector<1x128x128xf32> to vector<128x128xf32>
    %c1_10 = arith.constant 1 : index
    %c0_11 = arith.constant 0 : index
    %c0_12 = arith.constant 0 : index
    %13 = vector.load %arg3[%c1_10, %c0_11, %c0_12] : memref<2x1x128xf32, #tpu.memory_space<vmem>>, vector<1x1x128xf32>
    %14 = vector.shape_cast %13 : vector<1x1x128xf32> to vector<1x128xf32>
    %cst_13 = arith.constant dense<0.000000e+00> : vector<8x128xf32>
    %15 = tpu.matmul %10, %12, %cst_13 {dimension_numbers = #tpu.dot_dimension_numbers<[1], [0], [0], [1], [0, 0, 1, 1], [], []>} : vector<8x128xf32>, vector<128x128xf32>, vector<8x128xf32> -> vector<8x128xf32>
    %16 = vector.broadcast %14 : vector<1x128xf32> to vector<8x128xf32>
    %17 = arith.addf %15, %16 : vector<8x128xf32>
    %cst_14 = arith.constant 0.00999999977 : f32
    %18 = vector.broadcast %cst_14 : f32 to vector<8x128xf32>
    %19 = arith.mulf %18, %17 : vector<8x128xf32>
    %20 = arith.maximumf %17, %19 : vector<8x128xf32>
    %c0_15 = arith.constant 0 : index
    %c0_16 = arith.constant 0 : index
    %21 = vector.load %arg6[%c0_15, %c0_16] : memref<8x128xf32, #tpu.memory_space<vmem>>, vector<8x128xf32>
    tpu.vector_store %arg6[%c0_15, %c0_16], %20 {strides = array<i32>} : memref<8x128xf32, #tpu.memory_space<vmem>>, vector<8x128xf32>,
    %c0_17 = arith.constant 0 : index
    %c0_18 = arith.constant 0 : index
    %22 = vector.load %arg4[%c0_17, %c0_18] : memref<128x128xf32, #tpu.memory_space<vmem>>, vector<128x128xf32>
    %cst_19 = arith.constant dense<0.000000e+00> : vector<8x128xf32>
    %23 = tpu.matmul %20, %22, %cst_19 {dimension_numbers = #tpu.dot_dimension_numbers<[1], [0], [0], [1], [0, 0, 1, 1], [], []>} : vector<8x128xf32>, vector<128x128xf32>, vector<8x128xf32> -> vector<8x128xf32>
    %c0_20 = arith.constant 0 : index
    %c0_21 = arith.constant 0 : index
    %24 = vector.load %arg5[%c0_20, %c0_21] : memref<1x128xf32, #tpu.memory_space<vmem>>, vector<1x128xf32>
    %25 = vector.broadcast %24 : vector<1x128xf32> to vector<8x128xf32>
    %26 = arith.addf %23, %25 : vector<8x128xf32>
    %c0_22 = arith.constant 0 : index
    %c0_23 = arith.constant 0 : index
    %27 = vector.load %arg7[%c0_22, %c0_23] : memref<8x128xf32, #tpu.memory_space<vmem>>, vector<8x128xf32>
    tpu.vector_store %arg7[%c0_22, %c0_23], %26 {strides = array<i32>} : memref<8x128xf32, #tpu.memory_space<vmem>>, vector<8x128xf32>,
    return
  }
  func.func @transform_0(%arg0: i32) -> (i32, i32) {
    %c0_i32 = arith.constant 0 : i32
    %c0_i32_0 = arith.constant 0 : i32
    return %arg0, %c0_i32 : i32, i32
  }
  func.func @transform_1(%arg0: i32) -> (i32, i32, i32) {
    %c0_i32 = arith.constant 0 : i32
    %c0_i32_0 = arith.constant 0 : i32
    %c0_i32_1 = arith.constant 0 : i32
    %c0_i32_2 = arith.constant 0 : i32
    return %c0_i32, %c0_i32_0, %c0_i32_1 : i32, i32, i32
  }
  func.func @transform_2(%arg0: i32) -> (i32, i32, i32) {
    %c0_i32 = arith.constant 0 : i32
    %c0_i32_0 = arith.constant 0 : i32
    %c0_i32_1 = arith.constant 0 : i32
    %c0_i32_2 = arith.constant 0 : i32
    return %c0_i32, %c0_i32_0, %c0_i32_1 : i32, i32, i32
  }
  func.func @transform_3(%arg0: i32) -> (i32, i32) {
    %c0_i32 = arith.constant 0 : i32
    %c0_i32_0 = arith.constant 0 : i32
    %c0_i32_1 = arith.constant 0 : i32
    return %c0_i32, %c0_i32_0 : i32, i32
  }
  func.func @transform_4(%arg0: i32) -> (i32, i32) {
    %c0_i32 = arith.constant 0 : i32
    %c0_i32_0 = arith.constant 0 : i32
    %c0_i32_1 = arith.constant 0 : i32
    return %c0_i32, %c0_i32_0 : i32, i32
  }
  func.func @transform_5(%arg0: i32) -> (i32, i32) {
    %c0_i32 = arith.constant 0 : i32
    %c0_i32_0 = arith.constant 0 : i32
    return %arg0, %c0_i32 : i32, i32
  }
  func.func @transform_6(%arg0: i32) -> (i32, i32) {
    %c0_i32 = arith.constant 0 : i32
    %c0_i32_0 = arith.constant 0 : i32
    return %arg0, %c0_i32 : i32, i32
  }
}

</mosaic_0001>

<bundles_post_ra>
// kernel: tpu_custom_call.1
= control target key start
LH: loop header
LB: loop body
LE: loop exit
PB: predicated region body
PF: predicated region fallthrough
CT: control target
= control target key end

     0   :  { %12 = vsyncpa [#allocation3], 0  ;;  %s891_s0 = inlined_call_operand.hbm [shape: f32[8,128], index: 0, kind: input, shape index: {}]   ;;  %s892_s1 = inlined_call_operand.hbm [shape: f32[2,128,128], index: 1, kind: input, shape index: {}]   ;;  %s893_s2 = inlined_call_operand.vmem [shape: f32[2,1,128], index: 2, kind: input, shape index: {}]   ;;  %s894_s3 = inlined_call_operand.hbm [shape: f32[128,128], index: 3, kind: input, shape index: {}]   ;;  %s895_s4 = inlined_call_operand.vmem [shape: f32[1,128], index: 4, kind: input, shape index: {}]   ;;  %s896_s5 = inlined_call_operand.hbm [shape: f32[8,128], index: 5, kind: output, shape index: {0}]   ;;  %s897_s6 = inlined_call_operand.hbm [shape: f32[8,128], index: 6, kind: output, shape index: {1}]  }
   0x1   :  { %13 = vsyncpa [#allocation6], 0 }
   0x2   :  { %14 = vsyncpa [#allocation4], 0 }
   0x3   :  { %15 = vsyncpa [#allocation10], 0  ;;  %s741_s21 = smov [#allocation5]   ;;  %s623_s25 = scalar_lea.hbm %s892_s1, 4096 }
   0x4   :  { %s31_s22 = sshll.u32 %s741_s21, 4  ;;  %p624_p0 = scmp.ne.s32.totalorder %s892_s1, %s623_s25  ;;  %s32_s22 = int_to_ptr.vmem [resolvable:$true] %s31_s22 }
   0x5   :  { %p627_p1 = scmp.lt.u32.totalorder %s623_s25, %s892_s1 }
   0x7   :  { %p629_p2 = pnand %p627_p1, %p624_p0 }
   0x9   :  { %632 = shalt.err (!%p629_p2)
}
   0xa   :  { %s633_s30 = scalar_lea.vmem %s32_s22, 4096  ;;  %p638_p4 = scmp.lt.s32.totalorder %s32_s22, %s32_s22 }
   0xb   :  { %p634_p3 = scmp.ne.s32.totalorder %s32_s22, %s633_s30  ;;  %p639_p5 = scmp.lt.s32.totalorder %s633_s30, %s633_s30 }
   0xd   :  { %p640_p6 = por %p639_p5, %p638_p4 }
   0xf   :  { %p641_p7 = pnand %p640_p6, %p634_p3 }
  0x11   :  { %644 = shalt.err (!%p641_p7)
}
  0x12   :  { %s742_s7 = smov 128   ;;  %s743_s8 = smov 8  }
  0x13   :  { %37 = dma.hbm_to_vmem [thread:$0]  %s892_s1, 4096, %s32_s22, [#allocation6], %s742_s7, %s742_s7, %s743_s8  }
  0x14   :  { %s744_s11 = smov [#allocation2]   ;;  %s745_s13 = smov [#allocation7]  }
  0x15   :  { %s22_s12 = sshll.u32 %s744_s11, 4  ;;  %s45_s14 = sshll.u32 %s745_s13, 4  ;;  %s23_s12 = int_to_ptr.vmem [resolvable:$true] %s22_s12  ;;  %s46_s14 = int_to_ptr.vmem [resolvable:$true] %s45_s14 }
  0x16   :  { %s645_s17 = scalar_lea.hbm %s891_s0, 128 }
  0x17   :  { %p646_p8 = scmp.ne.s32.totalorder %s891_s0, %s645_s17  ;;  %p649_p9 = scmp.lt.u32.totalorder %s645_s17, %s891_s0 }
  0x19   :  { %p651_p10 = pnand %p649_p9, %p646_p8 }
  0x1b   :  { %654 = shalt.err (!%p651_p10)
}
  0x1c   :  { %s655_s1 = scalar_lea.vmem %s23_s12, 128  ;;  %p660_p12 = scmp.lt.s32.totalorder %s23_s12, %s23_s12 }
  0x1d   :  { %p656_p11 = scmp.ne.s32.totalorder %s23_s12, %s655_s1  ;;  %p661_p13 = scmp.lt.s32.totalorder %s655_s1, %s655_s1 }
  0x1f   :  { %p662_p0 = por %p661_p13, %p660_p12 }
  0x21   :  { %p663_p1 = pnand %p662_p0, %p656_p11 }
  0x23   :  { %666 = shalt.err (!%p663_p1)
}
  0x24   :  { %25 = dma.hbm_to_vmem [thread:$0]  %s891_s0, 128, %s23_s12, [#allocation3]  }
  0x25   :  { %s667_s26 = scalar_lea.hbm %s894_s3, 2048 }
  0x26   :  { %p668_p2 = scmp.ne.s32.totalorder %s894_s3, %s667_s26  ;;  %p671_p3 = scmp.lt.u32.totalorder %s667_s26, %s894_s3 }
  0x28   :  { %p673_p4 = pnand %p671_p3, %p668_p2 }
  0x2a   :  { %676 = shalt.err (!%p673_p4)
}
  0x2b   :  { %s677_s9 = scalar_lea.vmem %s46_s14, 2048  ;;  %p682_p6 = scmp.lt.s32.totalorder %s46_s14, %s46_s14 }
  0x2c   :  { %p678_p5 = scmp.ne.s32.totalorder %s46_s14, %s677_s9  ;;  %p683_p7 = scmp.lt.s32.totalorder %s677_s9, %s677_s9 }
  0x2e   :  { %p684_p8 = por %p683_p7, %p682_p6 }
  0x30   :  { %p685_p9 = pnand %p684_p8, %p678_p5 }
  0x32   :  { %688 = shalt.err (!%p685_p9)
}
  0x33   :  { %51 = dma.hbm_to_vmem [thread:$0]  %s894_s3, 2048, %s46_s14, [#allocation6], %s742_s7, %s742_s7, %s743_s8  }
  0x34   :  { %733 = dma.done.wait [#allocation3], 128  }
  0x35   :  { %734 = vsyncadd [#allocation3], 4294967168 }
  0x36   :  { %735 = dma.done.wait [#allocation6], 6144  }
  0x37   :  { %736 = vsyncadd [#allocation6], 4294961152  ;;  %v746_v0 = vmov 0.0|0.0   ;;  %vm747_vm0 = vmmov 0   ;;  %v748_v1 = vmov 0.0   ;;  %v64_v2 = vld [vmem:[#allocation5] sm:$0xff] }
  0x38   :  { %541 = vmatprep.subr.bf16.mxu0 %v746_v0  ;;  %468 = vmatprep.mubr.msk.f32.mxu0 %vm747_vm0, %v748_v1  ;;  %v65_v3 = vld [vmem:[#allocation5 + $0x8] sm:$0xff]  ;;  %v66_v4 = vld [vmem:[#allocation5 + $0x10] sm:$0xff]  ;;  %v67_v6 = vld [vmem:[#allocation5 + $0x18] sm:$0xff]  ;;  %s749_s12 = smov [#allocation8]  }
  0x39   :  { %565 = vmatprep.subr.bf16.mxu1 %v746_v0  ;;  %503 = vmatprep.mubr.msk.f32.mxu1 %vm747_vm0, %v748_v1  ;;  %v542_v5 = vpack.c.bf16 %v65_v3, %v64_v2  ;;  %v545_v7 = vpack.c.bf16 %v67_v6, %v66_v4  ;;  %v68_v8 = vld [vmem:[#allocation5 + $0x20] sm:$0xff]  ;;  %v69_v9 = vld [vmem:[#allocation5 + $0x28] sm:$0xff]  ;;  %v162_v12 = vld [vmem:[#allocation5 + $0x90] sm:$0xff]  ;;  %s357_s13 = sshll.u32 %s749_s12, 4  ;;  %s358_s13 = int_to_ptr.vmem [resolvable:$true] %s357_s13 }
  0x3a   :  { %v160_v10 = vld [vmem:[#allocation5 + $0x80] sm:$0xff]  ;;  %v161_v11 = vld [vmem:[#allocation5 + $0x88] sm:$0xff]  ;;  %v163_v13 = vld [vmem:[#allocation5 + $0x98] sm:$0xff]  ;;  %v548_v14 = vpack.c.bf16 %v69_v9, %v68_v8  ;;  %s689_s14 = scalar_lea.vmem %s358_s13, 128  ;;  %p694_p11 = scmp.lt.s32.totalorder %s358_s13, %s358_s13 }
  0x3b   :  { %543 = vmatpush3.bf16.msra.mxu0 %v542_v5  ;;  %v566_v15 = vpack.c.bf16 %v161_v11, %v160_v10  ;;  %v70_v16 = vld [vmem:[#allocation5 + $0x30] sm:$0xff]  ;;  %v71_v17 = vld [vmem:[#allocation5 + $0x38] sm:$0xff]  ;;  %v569_v18 = vpack.c.bf16 %v163_v13, %v162_v12  ;;  %v164_v19 = vld [vmem:[#allocation5 + $0xa0] sm:$0xff]  ;;  %p690_p10 = scmp.ne.s32.totalorder %s358_s13, %s689_s14  ;;  %p695_p12 = scmp.lt.s32.totalorder %s689_s14, %s689_s14 }
  0x3c   :  { %544 = vmatprep.subr.bf16.mxu0 %v746_v0  ;;  %v165_v20 = vld [vmem:[#allocation5 + $0xa8] sm:$0xff]  ;;  %v551_v21 = vpack.c.bf16 %v71_v17, %v70_v16  ;;  %v72_v22 = vld [vmem:[#allocation5 + $0x40] sm:$0xff]  ;;  %v166_v25 = vld [vmem:[#allocation5 + $0xb0] sm:$0xff] }
  0x3d   :  { %567 = vmatpush3.bf16.msra.mxu1 %v566_v15  ;;  %v73_v23 = vld [vmem:[#allocation5 + $0x48] sm:$0xff]  ;;  %v572_v24 = vpack.c.bf16 %v165_v20, %v164_v19  ;;  %v167_v26 = vld [vmem:[#allocation5 + $0xb8] sm:$0xff]  ;;  %v74_v28 = vld [vmem:[#allocation5 + $0x50] sm:$0xff]  ;;  %p696_p13 = por %p695_p12, %p694_p11 }
  0x3e   :  { %568 = vmatprep.subr.bf16.mxu1 %v746_v0  ;;  %v554_v27 = vpack.c.bf16 %v73_v23, %v72_v22  ;;  %v75_v29 = vld [vmem:[#allocation5 + $0x58] sm:$0xff]  ;;  %v575_v30 = vpack.c.bf16 %v167_v26, %v166_v25  ;;  %v168_v31 = vld [vmem:[#allocation5 + $0xc0] sm:$0xff]  ;;  %v169_v32 = vld [vmem:[#allocation5 + $0xc8] sm:$0xff] }
  0x3f   :  { %546 = vmatpush3.bf16.msra.mxu0 %v545_v7  ;;  %v557_v33 = vpack.c.bf16 %v75_v29, %v74_v28  ;;  %v76_v34 = vld [vmem:[#allocation5 + $0x60] sm:$0xff]  ;;  %v77_v35 = vld [vmem:[#allocation5 + $0x68] sm:$0xff]  ;;  %v578_v36 = vpack.c.bf16 %v169_v32, %v168_v31  ;;  %v170_v37 = vld [vmem:[#allocation5 + $0xd0] sm:$0xff]  ;;  %p697_p0 = pnand %p696_p13, %p690_p10 }
  0x40   :  { %547 = vmatprep.subr.bf16.mxu0 %v746_v0  ;;  %v171_v38 = vld [vmem:[#allocation5 + $0xd8] sm:$0xff]  ;;  %v560_v39 = vpack.c.bf16 %v77_v35, %v76_v34  ;;  %v78_v40 = vld [vmem:[#allocation5 + $0x70] sm:$0xff]  ;;  %v172_v45 = vld [vmem:[#allocation5 + $0xe0] sm:$0xff] }
  0x41   :  { %570 = vmatpush3.bf16.msra.mxu1 %v569_v18  ;;  %v79_v41 = vld [vmem:[#allocation5 + $0x78] sm:$0xff]  ;;  %v581_v42 = vpack.c.bf16 %v171_v38, %v170_v37  ;;  %v173_v46 = vld [vmem:[#allocation5 + $0xe8] sm:$0xff]  ;;  %v174_v48 = vld [vmem:[#allocation5 + $0xf0] sm:$0xff] }
  0x42   :  { %571 = vmatprep.subr.bf16.mxu1 %v746_v0  ;;  %v563_v43 = vpack.c.bf16 %v79_v41, %v78_v40  ;;  %v63_v44 = vld [vmem:[#allocation2] sm:$0xff]  ;;  %v584_v47 = vpack.c.bf16 %v173_v46, %v172_v45  ;;  %v257_v51 = vld [vmem:[#allocation7] sm:$0xff]  ;;  %v258_v52 = vld [vmem:[#allocation7 + $0x8] sm:$0xff] }
  0x43   :  { %549 = vmatpush3.bf16.msra.mxu0 %v548_v14  ;;  %v175_v49 = vld [vmem:[#allocation5 + $0xf8] sm:$0xff]  ;;  %v259_v53 = vld [vmem:[#allocation7 + $0x10] sm:$0xff]  ;;  %v590_v54 = vpack.c.bf16 %v258_v52, %v257_v51  ;;  %v261_v57 = vld [vmem:[#allocation7 + $0x20] sm:$0xff] }
  0x44   :  { %550 = vmatprep.subr.bf16.mxu0 %v746_v0  ;;  %v587_v50 = vpack.c.bf16 %v175_v49, %v174_v48  ;;  %v260_v55 = vld [vmem:[#allocation7 + $0x18] sm:$0xff]  ;;  %v262_v58 = vld [vmem:[#allocation7 + $0x28] sm:$0xff]  ;;  %v263_v60 = vld [vmem:[#allocation7 + $0x30] sm:$0xff] }
  0x45   :  { %573 = vmatpush3.bf16.msra.mxu1 %v572_v24  ;;  %v593_v56 = vpack.c.bf16 %v260_v55, %v259_v53  ;;  %v596_v59 = vpack.c.bf16 %v262_v58, %v261_v57  ;;  %v264_v61 = vld [vmem:[#allocation7 + $0x38] sm:$0xff]  ;;  %v265_v63 = vld [vmem:[#allocation7 + $0x40] sm:$0xff]  ;;  %v267_v3 = vld [vmem:[#allocation7 + $0x50] sm:$0xff] }
  0x46   :  { %574 = vmatprep.subr.bf16.mxu1 %v746_v0  ;;  %v599_v62 = vpack.c.bf16 %v264_v61, %v263_v60  ;;  %v268_v4 = vld [vmem:[#allocation7 + $0x58] sm:$0xff]  ;;  %v269_v12 = vld [vmem:[#allocation7 + $0x60] sm:$0xff]  ;;  %v270_v13 = vld [vmem:[#allocation7 + $0x68] sm:$0xff] }
  0x47   :  { %552 = vmatpush3.bf16.msra.mxu0 %v551_v21  ;;  %v605_v5 = vpack.c.bf16 %v268_v4, %v267_v3  ;;  %v381_v6 = vld [vmem:[%s893_s2] ss:$0 sm:$0xff]  ;;  %v608_v14 = vpack.c.bf16 %v270_v13, %v269_v12  ;;  %v271_v15 = vld [vmem:[#allocation7 + $0x70] sm:$0xff]  ;;  %v383_v18 = vld [vmem:[%s893_s2 + $0x1] ss:$0 sm:$0xff] }
  0x48   :  { %553 = vmatprep.subr.bf16.mxu0 %v746_v0  ;;  %v272_v16 = vld [vmem:[#allocation7 + $0x78] sm:$0xff] }
  0x49   :  { %576 = vmatpush3.bf16.msra.mxu1 %v575_v30  ;;  %v611_v17 = vpack.c.bf16 %v272_v16, %v271_v15 }
  0x4a   :  { %577 = vmatprep.subr.bf16.mxu1 %v746_v0 }
  0x4b   :  { %555 = vmatpush3.bf16.msra.mxu0 %v554_v27 }
  0x4c   :  { %556 = vmatprep.subr.bf16.mxu0 %v746_v0 }
  0x4d   :  { %579 = vmatpush3.bf16.msra.mxu1 %v578_v36 }
  0x4e   :  { %580 = vmatprep.subr.bf16.mxu1 %v746_v0 }
  0x4f   :  { %558 = vmatpush3.bf16.msra.mxu0 %v557_v33 }
  0x50   :  { %559 = vmatprep.subr.bf16.mxu0 %v746_v0 }
  0x51   :  { %582 = vmatpush3.bf16.msra.mxu1 %v581_v42 }
  0x52   :  { %583 = vmatprep.subr.bf16.mxu1 %v746_v0 }
  0x53   :  { %561 = vmatpush3.bf16.msra.mxu0 %v560_v39 }
  0x54   :  { %562 = vmatprep.subr.bf16.mxu0 %v746_v0 }
  0x55   :  { %585 = vmatpush3.bf16.msra.mxu1 %v584_v47 }
  0x56   :  { %586 = vmatprep.subr.bf16.mxu1 %v746_v0 }
  0x57   :  { %564 = vmatpush3.bf16.msra.mxu0 %v563_v43 }
  0x58   :  { %589 = vmatprep.subr.bf16.mxu0 %v746_v0 }
  0x59   :  { %588 = vmatpush3.bf16.msra.mxu1 %v587_v50 }
  0x5a   :  { %469 = vmatmul.mubr.f32.vlgmr.msra.gmra.mrb[0].mxu0 %v63_v44 }
  0x5b   :  { %538 = vmatprep.mubr.msk.f32.mxu0 %vm747_vm0, %v748_v1  ;;  %591 = vmatpush3.bf16.msra.mxu0 %v590_v54  ;;  %v266_v1 = vld [vmem:[#allocation7 + $0x48] sm:$0xff] }
  0x5c   :  { %592 = vmatprep.subr.bf16.mxu0 %v746_v0  ;;  %v602_v2 = vpack.c.bf16 %v266_v1, %v265_v63 }
  0x5f   :  { %594 = vmatpush3.bf16.msra.mxu0 %v593_v56 }
  0x60   :  { %595 = vmatprep.subr.bf16.mxu0 %v746_v0 }
  0x63   :  { %597 = vmatpush3.bf16.msra.mxu0 %v596_v59 }
  0x64   :  { %598 = vmatprep.subr.bf16.mxu0 %v746_v0 }
  0x67   :  { %600 = vmatpush3.bf16.msra.mxu0 %v599_v62 }
  0x68   :  { %601 = vmatprep.subr.bf16.mxu0 %v746_v0 }
  0x6b   :  { %603 = vmatpush3.bf16.msra.mxu0 %v602_v2 }
  0x6c   :  { %604 = vmatprep.subr.bf16.mxu0 %v746_v0 }
  0x6f   :  { %606 = vmatpush3.bf16.msra.mxu0 %v605_v5 }
  0x70   :  { %607 = vmatprep.subr.bf16.mxu0 %v746_v0 }
  0x73   :  { %609 = vmatpush3.bf16.msra.mxu0 %v608_v14 }
  0x74   :  { %610 = vmatprep.subr.bf16.mxu0 %v746_v0 }
  0x77   :  { %612 = vmatpush3.bf16.msra.mxu0 %v611_v17 }
 0x12d   :  { %v153_v7 = vpop.f32.mrb[0].mxu0 }
 0x12e   :  { %v154_v8 = vadd.f32 %v381_v6, %v153_v7  ;;  %v470_v9 = vpop.f32.mrb[1].mxu0 }
 0x130   :  { %v157_v10 = vmul.f32 0.01, %v154_v8 }
 0x132   :  { %v158_v11 = vmax.f32 %v154_v8, %v157_v10 }
 0x134   :  { %504 = vmatmul.mubr.f32.vlgmr.msra.gmra.mrb[0].mxu1 %v158_v11 }
 0x207   :  { %v250_v19 = vpop.f32.mrb[0].mxu1 }
 0x208   :  { %v251_v20 = vadd.f32 %v383_v18, %v250_v19  ;;  %v505_v21 = vpop.f32.mrb[1].mxu1 }
 0x20a   :  { %v254_v22 = vmul.f32 0.01, %v251_v20 }
 0x20c   :  { %v255_v23 = vmax.f32 %v251_v20, %v254_v22 }
 0x20e   :  { %256 = vst [vmem:[#allocation8] sm:$0xff] %v255_v23  ;;  %539 = vmatmul.mubr.f32.vlgmr.msra.gmra.mrb[2].mxu0 %v255_v23 }
 0x20f   :  { %700 = shalt.err (!%p697_p0)
}
 0x210   :  { %s701_s2 = scalar_lea.hbm %s896_s5, 128 }
 0x211   :  { %p702_p1 = scmp.ne.s32.totalorder %s896_s5, %s701_s2  ;;  %p705_p2 = scmp.lt.u32.totalorder %s701_s2, %s896_s5 }
 0x213   :  { %p707_p3 = pnand %p705_p2, %p702_p1 }
 0x215   :  { %710 = shalt.err (!%p707_p3)
}
 0x216   :  { %360 = dma.vmem_to_hbm [thread:$0]  %s358_s13, 128, %s896_s5, [#allocation4]   ;;  %v384_v0 = vld [vmem:[%s895_s4] ss:$0 sm:$0xff] }
 0x217   :  { %s750_s24 = smov [#allocation9]  }
 0x218   :  { %s367_s25 = sshll.u32 %s750_s24, 4  ;;  %s368_s25 = int_to_ptr.vmem [resolvable:$true] %s367_s25 }
 0x219   :  { %s711_s26 = scalar_lea.vmem %s368_s25, 128  ;;  %p716_p5 = scmp.lt.s32.totalorder %s368_s25, %s368_s25 }
 0x21a   :  { %p712_p4 = scmp.ne.s32.totalorder %s368_s25, %s711_s26  ;;  %p717_p6 = scmp.lt.s32.totalorder %s711_s26, %s711_s26 }
 0x21c   :  { %p718_p7 = por %p717_p6, %p716_p5 }
 0x21e   :  { %p719_p8 = pnand %p718_p7, %p712_p4 }
 0x2e1   :  { %v346_v24 = vpop.f32.mrb[2].mxu0 }
 0x2e2   :  { %v347_v25 = vadd.f32 %v384_v0, %v346_v24  ;;  %v540_v26 = vpop.f32.mrb[3].mxu0 }
 0x2e4   :  { %350 = vst [vmem:[#allocation9] sm:$0xff] %v347_v25 }
 0x2e5   :  { %722 = shalt.err (!%p719_p8)
}
 0x2e6   :  { %s723_s28 = scalar_lea.hbm %s897_s6, 128 }
 0x2e7   :  { %p724_p9 = scmp.ne.s32.totalorder %s897_s6, %s723_s28  ;;  %p727_p10 = scmp.lt.u32.totalorder %s723_s28, %s897_s6 }
 0x2e9   :  { %p729_p11 = pnand %p727_p10, %p724_p9 }
 0x2eb   :  { %732 = shalt.err (!%p729_p11)
}
 0x2ec   :  { %370 = dma.vmem_to_hbm [thread:$0]  %s368_s25, 128, %s897_s6, [#allocation10]  }
 0x2ed   :  { %737 = dma.done.wait [#allocation4], 128  }
 0x2ee   :  { %738 = vsyncadd [#allocation4], 4294967168 }
 0x2ef   :  { %739 = dma.done.wait [#allocation10], 128  }
 0x2f0   :  { %740 = vsyncadd [#allocation10], 4294967168 }
 0x2f1   :  { %377 = vsyncpa [#allocation3], 1 }
 0x2f2   :  { %378 = vsyncpa [#allocation6], 1 }
 0x2f3   :  { %379 = vsyncpa [#allocation4], 1 }
 0x2f4   :  { %380 = vsyncpa [#allocation10], 1 }

</bundles_post_ra>
